<compile_context>
chip_gen: v6e
topology: v6e:2x2x1
jax: 0.10.0
libtpu: 0.0.40
codegen_flags: <defaults>
</compile_context>

<pallas_src>
import functools

import jax
import jax.numpy as jnp
import numpy as np
from jax import lax
from jax.experimental import pallas as pl
from jax.experimental.pallas import tpu as pltpu

_LANES = 128
_MAX_BLOCK_ROWS = 4096          # (4096,128) f32 block = 2 MiB per input buffer
_MC_VMEM_BUDGET = 12 << 20      # budget for double-buffered in/out blocks (multi-class)
_VMEM_LIMIT = 48 << 20          # safe scoped-VMEM ceiling on v5e/v6e/v7x


def _round_up(x, m):
    return ((x + m - 1) // m) * m


def _focal_weight(one_minus_pt, gamma):
    """(1 - p_t)**gamma; unrolled multiplies for integer gamma (no exp/log)."""
    base = jnp.maximum(one_minus_pt, 0.0)  # guard tiny negative rounding
    is_int = isinstance(gamma, (int, np.integer)) or (
        isinstance(gamma, float) and float(gamma).is_integer())
    if is_int:
        g = int(gamma)
        if g == 0:
            return jnp.ones_like(base)
        out = base
        for _ in range(g - 1):
            out = out * base
        return out
    return base ** gamma  # non-integer gamma falls back to pow (EUP)


# ----------------------------------------------------------------------------
# Elementwise binary / multi-label math (shared by 'none' and reduce kernels)
# ----------------------------------------------------------------------------
def _binary_focal_elem(x, t, gamma, alpha):
    """Focal BCE-with-logits on a tile; x, t widened to f32 in-vreg."""
    x = x.astype(jnp.float32)
    t = t.astype(jnp.float32)
    # Shared exp(-|x|): derives both sigmoid and the stable softplus term.
    z = jnp.exp(-jnp.abs(x))                          # 1 EUP exp
    inv_1pz = pl.reciprocal(1.0 + z)                  # exact reciprocal
    probs = jnp.where(x >= 0, inv_1pz, z * inv_1pz)   # sigmoid(x)
    softplus = jnp.log(1.0 + z)                       # 1 EUP log (z in (0,1])
    bce = jnp.maximum(x, 0.0) - x * t + softplus
    p_t = probs * t + (1.0 - probs) * (1.0 - t)
    focal_w = _focal_weight(1.0 - p_t, gamma)
    if alpha is not None:
        alpha_t = alpha * t + (1.0 - alpha) * (1.0 - t)
        bce = alpha_t * bce
    return focal_w * bce


# ----------------------------------------------------------------------------
# Binary / multi-label kernels
# ----------------------------------------------------------------------------
def _binary_none_kernel(x_ref, t_ref, o_ref, *, gamma, alpha):
    loss = _binary_focal_elem(x_ref[...], t_ref[...], gamma, alpha)
    o_ref[...] = loss.astype(o_ref.dtype)


def _binary_partial_kernel(x_ref, t_ref, o_ref, *, gamma, alpha, n_valid):
    """Per-tile partial sums emitted as an (8,128) block (parallel grid axis)."""
    i = pl.program_id(0)
    last = pl.num_programs(0) - 1
    loss = _binary_focal_elem(x_ref[...], t_ref[...], gamma, alpha)
    tr, lanes = loss.shape

    def partial(l):
        # (tr,128) -> (tr//8, 8, 128): pure leading-axis split of (8,128) tiles,
        # reduced with cheap VPU adds (no wide XLU reduce in the hot loop).
        return jnp.sum(jnp.reshape(l, (tr // 8, 8, lanes)), axis=0)

    @pl.when(i != last)
    def _hot():  # interior tiles never hold padding -> no mask work
        o_ref[...] = partial(loss)

    @pl.when(i == last)
    def _tail():  # only the last tile can contain 128-pad / ragged garbage
        row_ids = lax.broadcasted_iota(jnp.int32, (tr, lanes), 0)
        lane_ids = lax.broadcasted_iota(jnp.int32, (tr, lanes), 1)
        gidx = i * (tr * lanes) + row_ids * lanes + lane_ids
        o_ref[...] = partial(jnp.where(gidx < n_valid, loss, 0.0))


# ----------------------------------------------------------------------------
# Multi-class kernels
# ----------------------------------------------------------------------------
def _softmax_stats(x, tgt, alpha_row):
    """Log-softmax / one-hot stats for a (tb, Cp) tile (padded classes inert)."""
    x = x.astype(jnp.float32)
    x_max = jnp.max(x, axis=1, keepdims=True)
    shifted = x - x_max
    lse = jnp.log(jnp.sum(jnp.exp(shifted), axis=1, keepdims=True))
    tb, cp = x.shape
    class_ids = lax.broadcasted_iota(jnp.int32, (tb, cp), 1)
    one_hot = (class_ids == tgt).astype(jnp.float32)
    log_pt = jnp.sum(one_hot * shifted, axis=1, keepdims=True) - lse   # (tb,1)
    alpha_t = None
    if alpha_row is not None:
        alpha_t = jnp.sum(one_hot * alpha_row.astype(jnp.float32), axis=1,
                          keepdims=True)
    return shifted, lse, one_hot, log_pt, alpha_t


def _multiclass_none_kernel(*refs, gamma, has_alpha):
    if has_alpha:
        x_ref, t_ref, a_ref, o_ref = refs
        alpha_row = a_ref[...]
    else:
        x_ref, t_ref, o_ref = refs
        alpha_row = None
    shifted, lse, one_hot, log_pt, alpha_t = _softmax_stats(
        x_ref[...], t_ref[...], alpha_row)
    logp = shifted - lse
    ce = -one_hot * logp                 # log-softmax form: no 0*(-inf) NaN
    focal_w = _focal_weight(1.0 - jnp.exp(log_pt), gamma)
    if alpha_t is not None:
        ce = alpha_t * ce
    o_ref[...] = (focal_w * ce).astype(o_ref.dtype)


def _multiclass_rowloss_kernel(*refs, gamma, has_alpha):
    if has_alpha:
        x_ref, t_ref, a_ref, o_ref = refs
        alpha_row = a_ref[...]
    else:
        x_ref, t_ref, o_ref = refs
        alpha_row = None
    _, _, _, log_pt, alpha_t = _softmax_stats(x_ref[...], t_ref[...], alpha_row)
    # Exactly one class per row is non-zero in the (tb, C) map, so its row-sum
    # is focal_w * alpha_t * (-log_pt): no (tb, C) ce map is materialised.
    row_loss = _focal_weight(1.0 - jnp.exp(log_pt), gamma) * (-log_pt)
    if alpha_t is not None:
        row_loss = alpha_t * row_loss
    o_ref[...] = row_loss


# ----------------------------------------------------------------------------
# Module wrapper
# ----------------------------------------------------------------------------
class FocalLoss:
    """JAX/Pallas port of the PyTorch FocalLoss module (forward only)."""

    def __init__(self, gamma=2, alpha=None, reduction="mean",
                 task_type="binary", num_classes=None,
                 max_block_rows=_MAX_BLOCK_ROWS):
        self.gamma = gamma
        self.alpha = alpha
        self.reduction = reduction
        self.task_type = task_type
        self.num_classes = num_classes
        self.max_block_rows = max(8, int(max_block_rows))  # tuning/test knob
        if task_type == "multi-class" and alpha is not None and isinstance(
                alpha, (list, tuple, np.ndarray, jnp.ndarray)):
            assert num_classes is not None, (
                "num_classes must be specified for multi-class classification")
            self.alpha = jnp.asarray(alpha, dtype=jnp.float32)

    # ---------------------------------------------- binary / multi-label
    def _binary_like(self, inputs, targets):
        orig_shape = inputs.shape
        out_dtype = (inputs.dtype if jnp.issubdtype(inputs.dtype, jnp.floating)
                     else jnp.float32)
        n = int(np.prod(orig_shape)) if len(orig_shape) else 1
        x_flat = jnp.reshape(inputs, (-1,))
        t_flat = jnp.reshape(targets, (-1,))

        # Pad only to lane (128) granularity; ragged sublane / ragged last grid
        # tile is handled in-kernel, so no round-up to a tile multiple and no
        # wrapper copies when n is already lane-aligned.
        padded_n = _round_up(n, _LANES)
        if padded_n != n:
            x_flat = jnp.pad(x_flat, (0, padded_n - n))
            t_flat = jnp.pad(t_flat, (0, padded_n - n))
        rows = padded_n // _LANES
        x2d = jnp.reshape(x_flat, (rows, _LANES))
        t2d = jnp.reshape(t_flat, (rows, _LANES))

        tile_rows = _round_up(min(self.max_block_rows, _round_up(rows, 8)), 8)
        grid = (pl.cdiv(rows, tile_rows),)
        in_specs = [pl.BlockSpec((tile_rows, _LANES), lambda i: (i, 0)),
                    pl.BlockSpec((tile_rows, _LANES), lambda i: (i, 0))]
        alpha = None if self.alpha is None else float(self.alpha)
        cparams = pltpu.CompilerParams(dimension_semantics=("parallel",),
                                       vmem_limit_bytes=_VMEM_LIMIT)

        if self.reduction in ("mean", "sum"):
            kernel = functools.partial(_binary_partial_kernel, gamma=self.gamma,
                                       alpha=alpha, n_valid=n)
            partials = pl.pallas_call(
                kernel,
                out_shape=jax.ShapeDtypeStruct((grid[0] * 8, _LANES),
                                               jnp.float32),
                grid=grid,
                in_specs=in_specs,
                out_specs=pl.BlockSpec((8, _LANES), lambda i: (i, 0)),
                compiler_params=cparams,
            )(x2d, t2d)
            total = jnp.sum(partials)       # tiny second-stage reduce
            return total / n if self.reduction == "mean" else total

        kernel = functools.partial(_binary_none_kernel, gamma=self.gamma,
                                   alpha=alpha)
        out = pl.pallas_call(
            kernel,
            out_shape=jax.ShapeDtypeStruct((rows, _LANES), out_dtype),
            grid=grid,
            in_specs=in_specs,
            out_specs=pl.BlockSpec((tile_rows, _LANES), lambda i: (i, 0)),
            compiler_params=cparams,
        )(x2d, t2d)
        flat = jnp.reshape(out, (-1,))
        if padded_n != n:
            flat = flat[:n]
        return jnp.reshape(flat, orig_shape)

    # ---------------------------------------------------- multi-class
    def _multi_class(self, inputs, targets):
        B, C = inputs.shape
        in_dtype = inputs.dtype
        out_dtype = (in_dtype if jnp.issubdtype(in_dtype, jnp.floating)
                     else jnp.float32)

        # Lane-dense class dim: pad C up to a multiple of 128 with a very
        # negative logit (drops out of logsumexp; targets never hit it).
        Cp = _round_up(C, _LANES)
        x = inputs
        if Cp != C:
            fill = (float(jnp.finfo(in_dtype).min) * 0.5
                    if jnp.issubdtype(in_dtype, jnp.floating) else -1e30)
            x = jnp.pad(x, ((0, 0), (0, Cp - C)), constant_values=fill)
        tgt = jnp.reshape(targets.astype(jnp.int32), (B, 1))

        has_alpha = self.alpha is not None
        args = [x, tgt]

        # VMEM-budgeted batch tile (double-buffered in + out blocks).
        in_bytes = jnp.dtype(in_dtype).itemsize
        bytes_per_row = 2 * Cp * in_bytes + 2 * 4     # logits + targets col
        if self.reduction == "none":
            bytes_per_row += 2 * Cp * jnp.dtype(out_dtype).itemsize
        else:
            bytes_per_row += 2 * 4
        tile_b = int(_MC_VMEM_BUDGET // max(bytes_per_row, 1))
        tile_b = max(8, min(1024, (tile_b // 8) * 8))
        tile_b = min(tile_b, _round_up(B, 8))
        grid = (pl.cdiv(B, tile_b),)

        in_specs = [pl.BlockSpec((tile_b, Cp), lambda i: (i, 0)),
                    pl.BlockSpec((tile_b, 1), lambda i: (i, 0))]
        if has_alpha:
            alpha_arr = jnp.asarray(self.alpha, dtype=jnp.float32)
            if alpha_arr.ndim == 0:
                alpha_arr = jnp.full((C,), alpha_arr, dtype=jnp.float32)
            alpha_arr = jnp.reshape(alpha_arr, (1, C))
            if Cp != C:
                alpha_arr = jnp.pad(alpha_arr, ((0, 0), (0, Cp - C)))
            args.append(alpha_arr)
            in_specs.append(pl.BlockSpec((1, Cp), lambda i: (0, 0)))
        cparams = pltpu.CompilerParams(dimension_semantics=("parallel",),
                                       vmem_limit_bytes=_VMEM_LIMIT)

        if self.reduction in ("mean", "sum"):
            kernel = functools.partial(_multiclass_rowloss_kernel,
                                       gamma=self.gamma, has_alpha=has_alpha)
            row_loss = pl.pallas_call(
                kernel,
                out_shape=jax.ShapeDtypeStruct((B, 1), jnp.float32),
                grid=grid,
                in_specs=in_specs,
                out_specs=pl.BlockSpec((tile_b, 1), lambda i: (i, 0)),
                compiler_params=cparams,
            )(*args)
            total = jnp.sum(row_loss)
            # PyTorch module takes .mean() over the full (B, C) loss map.
            return total / (B * C) if self.reduction == "mean" else total

        kernel = functools.partial(_multiclass_none_kernel, gamma=self.gamma,
                                   has_alpha=has_alpha)
        out = pl.pallas_call(
            kernel,
            out_shape=jax.ShapeDtypeStruct((B, Cp), out_dtype),
            grid=grid,
            in_specs=in_specs,
            out_specs=pl.BlockSpec((tile_b, Cp), lambda i: (i, 0)),
            compiler_params=cparams,
        )(*args)
        return out[:, :C] if Cp != C else out

    def __call__(self, inputs, targets):
        if self.task_type == "binary":
            return self._binary_like(inputs, targets)
        elif self.task_type == "multi-class":
            return self._multi_class(inputs, targets)
        elif self.task_type == "multi-label":
            return self._binary_like(inputs, targets)
        raise ValueError(f"Unsupported task_type '{self.task_type}'.")


# ----------------------------------------------------------------------------
# Pure-JAX references (verification only)
# ----------------------------------------------------------------------------
def _ref_binary(x, t, gamma, alpha, reduction):
    x = x.astype(jnp.float32)
    t = t.astype(jnp.float32)
    probs = jax.nn.sigmoid(x)
    bce = jnp.maximum(x, 0.0) - x * t + jnp.log(1.0 + jnp.exp(-jnp.abs(x)))
    p_t = probs * t + (1 - probs) * (1 - t)
    fw = (1 - p_t) ** gamma
    if alpha is not None:
        bce = (alpha * t + (1 - alpha) * (1 - t)) * bce
    loss = fw * bce
    if reduction == "mean":
        return jnp.mean(loss)
    if reduction == "sum":
        return jnp.sum(loss)
    return loss


def _ref_multiclass(x, t, gamma, alpha, num_classes, reduction):
    x = x.astype(jnp.float32)
    logp = jax.nn.log_softmax(x, axis=1)
    oh = jax.nn.one_hot(t, num_classes, dtype=jnp.float32)
    ce = -oh * logp
    p_t = jnp.exp(jnp.sum(oh * logp, axis=1))
    fw = (1 - p_t) ** gamma
    if alpha is not None:
        ce = alpha[t][:, None] * ce
    loss = fw[:, None] * ce
    if reduction == "mean":
        return jnp.mean(loss)
    if reduction == "sum":
        return jnp.sum(loss)
    return loss


# ----------------------------------------------------------------------------
if __name__ == "__main__":
    key = jax.random.PRNGKey(0)
    ks = jax.random.split(key, 10)

    # -------- binary, module defaults (gamma=2, alpha=None, 'mean'), B=16
    B = 16
    bin_logits = jax.random.normal(ks[0], (B,), dtype=jnp.float32)
    bin_targets = jax.random.bernoulli(ks[1], 0.5, (B,)).astype(jnp.float32)
    out_bin = jax.block_until_ready(FocalLoss()(bin_logits, bin_targets))
    ref_bin = _ref_binary(bin_logits, bin_targets, 2, None, "mean")
    assert np.allclose(np.asarray(out_bin), np.asarray(ref_bin),
                       rtol=1e-5, atol=1e-5)

    # -------- multi-class (gamma=2, per-class alpha), B=10 (ragged), C=16
    Bm, C = 10, 16
    mc_logits = jax.random.normal(ks[2], (Bm, C), dtype=jnp.float32)
    mc_targets = jax.random.randint(ks[3], (Bm,), 0, C, dtype=jnp.int32)
    alpha_vec = np.linspace(0.1, 1.0, C).astype(np.float32).tolist()
    fl_mc = FocalLoss(gamma=2, alpha=alpha_vec, reduction="mean",
                      task_type="multi-class", num_classes=C)
    out_mc = jax.block_until_ready(fl_mc(mc_logits, mc_targets))
    ref_mc = _ref_multiclass(mc_logits, mc_targets, 2,
                             jnp.asarray(alpha_vec), C, "mean")
    assert np.allclose(np.asarray(out_mc), np.asarray(ref_mc),
                       rtol=1e-5, atol=1e-5)

    fl_mc_none = FocalLoss(gamma=2, alpha=alpha_vec, reduction="none",
                           task_type="multi-class", num_classes=C)
    out_mc_n = jax.block_until_ready(fl_mc_none(mc_logits, mc_targets))
    ref_mc_n = _ref_multiclass(mc_logits, mc_targets, 2,
                               jnp.asarray(alpha_vec), C, "none")
    assert out_mc_n.shape == (Bm, C)
    assert np.allclose(np.asarray(out_mc_n), np.asarray(ref_mc_n),
                       rtol=1e-5, atol=1e-5)

    # -------- multi-label (scalar alpha, 'sum'), B=8, C=16
    ml_logits = jax.random.normal(ks[4], (8, C), dtype=jnp.float32)
    ml_targets = jax.random.bernoulli(ks[5], 0.3, (8, C)).astype(jnp.float32)
    fl_ml = FocalLoss(gamma=2, alpha=0.25, reduction="sum",
                      task_type="multi-label")
    out_ml = jax.block_until_ready(fl_ml(ml_logits, ml_targets))
    ref_ml = _ref_binary(ml_logits, ml_targets, 2, 0.25, "sum")
    assert np.allclose(np.asarray(out_ml), np.asarray(ref_ml),
                       rtol=1e-5, atol=1e-5)

    # -------- multi-tile binary: small block override exercises grid > 1,
    # ragged last tile, last-tile-only masking and the parallel partial sums.
    n_big = 5000
    big_logits = 3.0 * jax.random.normal(ks[6], (n_big,), dtype=jnp.float32)
    big_targets = jax.random.bernoulli(ks[7], 0.5, (n_big,)).astype(jnp.float32)
    fl_big_mean = FocalLoss(gamma=2, alpha=0.25, reduction="mean",
                            max_block_rows=16)
    out_big = jax.block_until_ready(fl_big_mean(big_logits, big_targets))
    ref_big = _ref_binary(big_logits, big_targets, 2, 0.25, "mean")
    assert np.allclose(np.asarray(out_big), np.asarray(ref_big),
                       rtol=1e-4, atol=1e-6)

    fl_big_none = FocalLoss(gamma=2, alpha=0.25, reduction="none",
                            max_block_rows=16)
    out_none = jax.block_until_ready(fl_big_none(big_logits, big_targets))
    ref_none = _ref_binary(big_logits, big_targets, 2, 0.25, "none")
    assert out_none.shape == (n_big,)
    assert np.allclose(np.asarray(out_none), np.asarray(ref_none),
                       rtol=1e-4, atol=1e-6)

    print("KERNEL_OK")
</pallas_src>

<mosaic_0001>
module attributes {stable_mosaic.version = 11 : i64} {
  func.func @_binary_partial_kernel(%arg0: i32, %arg1: memref<8x128xf32, #tpu.memory_space<vmem>>, %arg2: memref<8x128xf32, #tpu.memory_space<vmem>>, %arg3: memref<8x128xf32, #tpu.memory_space<vmem>>) attributes {dimension_semantics = [#tpu.dimension_semantics<parallel>], iteration_bounds = array<i64: 1>, scalar_prefetch = 0 : i64, scratch_operands = 0 : i64, tpu.core_type = #tpu.core_type<tc>, window_params = [{transform_indices = @transform_0, window_bounds = array<i64: 8, 128>}, {transform_indices = @transform_1, window_bounds = array<i64: 8, 128>}, {transform_indices = @transform_2, window_bounds = array<i64: 8, 128>}]} {
    %c0 = arith.constant 0 : index
    %c0_0 = arith.constant 0 : index
    %0 = vector.load %arg1[%c0, %c0_0] : memref<8x128xf32, #tpu.memory_space<vmem>>, vector<8x128xf32>
    %c0_1 = arith.constant 0 : index
    %c0_2 = arith.constant 0 : index
    %1 = vector.load %arg2[%c0_1, %c0_2] : memref<8x128xf32, #tpu.memory_space<vmem>>, vector<8x128xf32>
    %2 = math.absf %0 : vector<8x128xf32>
    %cst = arith.constant 0.000000e+00 : f32
    %3 = vector.broadcast %cst : f32 to vector<8x128xf32>
    %4 = arith.subf %3, %2 : vector<8x128xf32>
    %5 = math.exp %4 : vector<8x128xf32>
    %cst_3 = arith.constant 1.000000e+00 : f32
    %6 = vector.broadcast %cst_3 : f32 to vector<8x128xf32>
    %7 = arith.addf %6, %5 : vector<8x128xf32>
    %8 = tpu.reciprocal %7 : vector<8x128xf32> -> vector<8x128xf32>
    %cst_4 = arith.constant 0.000000e+00 : f32
    %9 = vector.broadcast %cst_4 : f32 to vector<8x128xf32>
    %10 = arith.cmpf oge, %0, %9 : vector<8x128xf32>
    %11 = arith.mulf %5, %8 : vector<8x128xf32>
    %12 = arith.select %10, %8, %11 : vector<8x128xi1>, vector<8x128xf32>
    %cst_5 = arith.constant 1.000000e+00 : f32
    %13 = vector.broadcast %cst_5 : f32 to vector<8x128xf32>
    %14 = arith.addf %13, %5 : vector<8x128xf32>
    %15 = math.log %14 : vector<8x128xf32>
    %cst_6 = arith.constant 0.000000e+00 : f32
    %16 = vector.broadcast %cst_6 : f32 to vector<8x128xf32>
    %17 = arith.maximumf %0, %16 : vector<8x128xf32>
    %18 = arith.mulf %0, %1 : vector<8x128xf32>
    %19 = arith.subf %17, %18 : vector<8x128xf32>
    %20 = arith.addf %19, %15 : vector<8x128xf32>
    %21 = arith.mulf %12, %1 : vector<8x128xf32>
    %cst_7 = arith.constant 1.000000e+00 : f32
    %22 = vector.broadcast %cst_7 : f32 to vector<8x128xf32>
    %23 = arith.subf %22, %12 : vector<8x128xf32>
    %cst_8 = arith.constant 1.000000e+00 : f32
    %24 = vector.broadcast %cst_8 : f32 to vector<8x128xf32>
    %25 = arith.subf %24, %1 : vector<8x128xf32>
    %26 = arith.mulf %23, %25 : vector<8x128xf32>
    %27 = arith.addf %21, %26 : vector<8x128xf32>
    %cst_9 = arith.constant 1.000000e+00 : f32
    %28 = vector.broadcast %cst_9 : f32 to vector<8x128xf32>
    %29 = arith.subf %28, %27 : vector<8x128xf32>
    %cst_10 = arith.constant 0.000000e+00 : f32
    %30 = vector.broadcast %cst_10 : f32 to vector<8x128xf32>
    %31 = arith.maximumf %29, %30 : vector<8x128xf32>
    %32 = arith.mulf %31, %31 : vector<8x128xf32>
    %33 = arith.mulf %32, %20 : vector<8x128xf32>
    %c0_i32 = arith.constant 0 : i32
    %34 = arith.cmpi ne, %arg0, %c0_i32 : i32
    %35 = arith.extui %34 : i1 to i32
    %c0_i32_11 = arith.constant 0 : i32
    %36 = arith.cmpi ne, %35, %c0_i32_11 : i32
    scf.if %36 {
      %40 = vector.shape_cast %33 : vector<8x128xf32> to vector<1x8x128xf32>
      %cst_14 = arith.constant dense<0.000000e+00> : vector<8x128xf32>
      %41 = vector.multi_reduction <add>, %40, %cst_14 [0] : vector<1x8x128xf32> to vector<8x128xf32>
      %c0_15 = arith.constant 0 : index
      %c0_16 = arith.constant 0 : index
      %42 = vector.load %arg3[%c0_15, %c0_16] : memref<8x128xf32, #tpu.memory_space<vmem>>, vector<8x128xf32>
      tpu.vector_store %arg3[%c0_15, %c0_16], %41 {strides = array<i32>} : memref<8x128xf32, #tpu.memory_space<vmem>>, vector<8x128xf32>,
    } else {
    }
    %c0_i32_12 = arith.constant 0 : i32
    %37 = arith.cmpi eq, %arg0, %c0_i32_12 : i32
    %38 = arith.extui %37 : i1 to i32
    %c0_i32_13 = arith.constant 0 : i32
    %39 = arith.cmpi ne, %38, %c0_i32_13 : i32
    scf.if %39 {
      %40 = tpu.iota {dimensions = array<i32: 0>} : vector<8x128xi32>
      %41 = tpu.iota {dimensions = array<i32: 1>} : vector<8x128xi32>
      %c1024_i32 = arith.constant 1024 : i32
      %42 = arith.muli %arg0, %c1024_i32 : i32
      %c128_i32 = arith.constant 128 : i32
      %43 = vector.broadcast %c128_i32 : i32 to vector<8x128xi32>
      %44 = arith.muli %40, %43 : vector<8x128xi32>
      %45 = vector.broadcast %42 : i32 to vector<8x128xi32>
      %46 = arith.addi %45, %44 : vector<8x128xi32>
      %47 = arith.addi %46, %41 : vector<8x128xi32>
      %c16_i32 = arith.constant 16 : i32
      %48 = vector.broadcast %c16_i32 : i32 to vector<8x128xi32>
      %49 = arith.cmpi slt, %47, %48 : vector<8x128xi32>
      %cst_14 = arith.constant 0.000000e+00 : f32
      %50 = vector.broadcast %cst_14 : f32 to vector<8x128xf32>
      %51 = arith.select %49, %33, %50 : vector<8x128xi1>, vector<8x128xf32>
      %52 = vector.shape_cast %51 : vector<8x128xf32> to vector<1x8x128xf32>
      %cst_15 = arith.constant dense<0.000000e+00> : vector<8x128xf32>
      %53 = vector.multi_reduction <add>, %52, %cst_15 [0] : vector<1x8x128xf32> to vector<8x128xf32>
      %c0_16 = arith.constant 0 : index
      %c0_17 = arith.constant 0 : index
      %54 = vector.load %arg3[%c0_16, %c0_17] : memref<8x128xf32, #tpu.memory_space<vmem>>, vector<8x128xf32>
      tpu.vector_store %arg3[%c0_16, %c0_17], %53 {strides = array<i32>} : memref<8x128xf32, #tpu.memory_space<vmem>>, vector<8x128xf32>,
    } else {
    }
    return
  }
  func.func @transform_0(%arg0: i32) -> (i32, i32) {
    %c0_i32 = arith.constant 0 : i32
    %c0_i32_0 = arith.constant 0 : i32
    return %arg0, %c0_i32 : i32, i32
  }
  func.func @transform_1(%arg0: i32) -> (i32, i32) {
    %c0_i32 = arith.constant 0 : i32
    %c0_i32_0 = arith.constant 0 : i32
    return %arg0, %c0_i32 : i32, i32
  }
  func.func @transform_2(%arg0: i32) -> (i32, i32) {
    %c0_i32 = arith.constant 0 : i32
    %c0_i32_0 = arith.constant 0 : i32
    return %arg0, %c0_i32 : i32, i32
  }
}

</mosaic_0001>

<bundles_post_ra>
// kernel: tpu_custom_call.1
= control target key start
LH: loop header
LB: loop body
LE: loop exit
PB: predicated region body
PF: predicated region fallthrough
CT: control target
= control target key end

     0   :  { %7 = vsyncpa [#allocation3], 0  ;;  %s172_s0 = inlined_call_operand.hbm [shape: f32[1,128], index: 0, kind: input, shape index: {}]   ;;  %s173_s1 = inlined_call_operand.vmem [shape: f32[1,128], index: 1, kind: input, shape index: {}]   ;;  %s174_s2 = inlined_call_operand.hbm [shape: f32[8,128], index: 2, kind: output, shape index: {}]  }
   0x1   :  { %8 = vsyncpa [#allocation4], 0 }
   0x2   :  { %13 = vsyncadd [#allocation3], 112  ;;  %s144_s9 = smov [#allocation2]  }
   0x3   :  { %s14_s10 = sshll.u32 %s144_s9, 4  ;;  %s15_s10 = int_to_ptr.vmem [resolvable:$true] %s14_s10 }
   0x4   :  { %s108_s11 = scalar_lea.vmem %s15_s10, 16  ;;  %s112_s12 = scalar_lea.vmem %s15_s10, 128 }
   0x5   :  { %p109_p0 = scmp.ne.s32.totalorder %s15_s10, %s108_s11  ;;  %p113_p1 = scmp.lt.s32.totalorder %s15_s10, %s15_s10 }
   0x6   :  { %p114_p2 = scmp.lt.s32.totalorder %s112_s12, %s108_s11 }
   0x8   :  { %p115_p3 = por %p114_p2, %p113_p1 }
   0xa   :  { %p116_p4 = pnand %p115_p3, %p109_p0 }
   0xc   :  { %119 = shalt.err (!%p116_p4)
}
   0xd   :  { %s145_s13 = smov 16   ;;  %s146_s14 = smov 1  }
   0xe   :  { %20 = dma.hbm_to_vmem [thread:$0]  %s172_s0, 16, %s15_s10, [#allocation3], %s145_s13, %s145_s13, %s146_s14  }
   0xf   :  { %140 = dma.done.wait [#allocation3], 128  }
  0x10   :  { %141 = vsyncadd [#allocation3], 4294967168  ;;  %v26_v0 = vld [vmem:[#allocation2] sm:$0xff]  ;;  %v62_v7 = vlaneseq  ;;  %s147_s0 = smov [#allocation5]  }
  0x11   :  { %v28_v1 = vand.u32 2147483647, %v26_v0  ;;  %v27_v6 = vld [vmem:[%s173_s1] sm:$0xff]  ;;  %vm34_vm0 = vcmp.ge.f32.partialorder %v26_v0, 0.0  ;;  %v39_v13 = vmax.f32 %v26_v0, 0.0  ;;  %s81_s1 = sshll.u32 %s147_s0, 4  ;;  %s82_s1 = int_to_ptr.vmem [resolvable:$true] %s81_s1 }
  0x12   :  { %v45_v10 = vsub.f32 1.0, %v27_v6  ;;  %v63_v12 = vshrl.u32 %v62_v7, 7  ;;  %v40_v14 = vmul.f32 %v27_v6, %v26_v0  ;;  %v65_v19 = vand.u32 127, %v62_v7  ;;  %s120_s19 = scalar_lea.vmem %s82_s1, 128  ;;  %p125_p6 = scmp.lt.s32.totalorder %s82_s1, %s82_s1 }
  0x13   :  { %v29_v2 = vsub.f32 0.0, %v28_v1  ;;  %p121_p5 = scmp.ne.s32.totalorder %s82_s1, %s120_s19  ;;  %p126_p7 = scmp.lt.s32.totalorder %s120_s19, %s120_s19 }
  0x14   :  { %v67_v20 = vmul.u32 128, %v63_v12  ;;  %v41_v22 = vsub.f32 %v39_v13, %v40_v14 }
  0x15   :  { %v30_v3 = vmul.f32 1.442695, %v29_v2  ;;  %p127_p8 = por %p126_p7, %p125_p6 }
  0x16   :  { %v70_v25 = vadd.s32 %v67_v20, %v65_v19 }
  0x17   :  { %94 = vpow2.f32 %v30_v3  ;;  %p128_p9 = pnand %p127_p8, %p121_p5 }
  0x18   :  { %vm71_vm1 = vcmp.lt.s32.totalorder %v70_v25, 16 }
  0x24   :  { %v95_v4 = vpop.eup %94 }
  0x25   :  { %v32_v5 = vadd.f32 1.0, %v95_v4 }
  0x27   :  { %96 = vrcp.f32 %v32_v5 }
  0x28   :  { %98 = vlog2.f32 %v32_v5 }
  0x34   :  { %v97_v8 = vpop.eup %96 }
  0x35   :  { %v35_v9 = vmul.f32 %v97_v8, %v95_v4  ;;  %v99_v17 = vpop.eup %98 }
  0x36   :  { %v38_v21 = vmul.f32 0.6931472, %v99_v17 }
  0x37   :  { %v36_v11 = vsel %vm34_vm0, %v97_v8, %v35_v9 }
  0x38   :  { %v43_v15 = vmul.f32 %v36_v11, %v27_v6  ;;  %v44_v16 = vsub.f32 1.0, %v36_v11  ;;  %v42_v26 = vadd.f32 %v41_v22, %v38_v21 }
  0x3a   :  { %v46_v18 = vmul.f32 %v45_v10, %v44_v16 }
  0x3c   :  { %v47_v23 = vadd.f32 %v46_v18, %v43_v15 }
  0x3e   :  { %v48_v24 = vsub.f32 1.0, %v47_v23 }
  0x40   :  { %v49_v27 = vmax.f32 %v48_v24, 0.0 }
  0x42   :  { %v50_v28 = vmul.f32 %v49_v27, %v49_v27 }
  0x44   :  { %v51_v29 = vmul.f32 %v50_v28, %v42_v26 }
  0x46   :  { %v72_v30 = vsel %vm71_vm1, %v51_v29, 0.0 }
  0x47   :  { %74 = vst [vmem:[#allocation5] sm:$0xff] %v72_v30 }
  0x48   :  { %131 = shalt.err (!%p128_p9)
}
  0x49   :  { %84 = dma.vmem_to_hbm [thread:$0]  %s82_s1, 128, %s174_s2, [#allocation4]  }
  0x4a   :  { %142 = dma.done.wait [#allocation4], 128  }
  0x4b   :  { %143 = vsyncadd [#allocation4], 4294967168 }
  0x4c   :  { %88 = vsyncpa [#allocation3], 1 }
  0x4d   :  { %89 = vsyncpa [#allocation4], 1 }

</bundles_post_ra>
